<compile_context>
chip_gen: v5e
topology: v5e:2x2
jax: 0.10.0
libtpu: 0.0.40
codegen_flags: <defaults>
</compile_context>

<pallas_src>
import functools

import jax
import jax.numpy as jnp
import numpy as np
from jax.experimental import pallas as pl
from jax.experimental.pallas import tpu as pltpu


# ----------------------------------------------------------------------------
# align_corners=True 1-D linear interpolation matrix (PyTorch convention)
# ----------------------------------------------------------------------------
@functools.lru_cache(maxsize=None)
def _interp_matrix(in_size: int, out_size: int) -> np.ndarray:
    """W of shape (out_size, in_size) s.t. y = W @ x is 1-D linear
    interpolation with align_corners=True."""
    if out_size == 1:
        src = np.zeros((1,), dtype=np.float64)
    else:
        src = np.arange(out_size, dtype=np.float64) * (in_size - 1) / (out_size - 1)
    lo = np.clip(np.floor(src).astype(np.int64), 0, in_size - 1)
    hi = np.clip(lo + 1, 0, in_size - 1)
    w_hi = src - lo
    w_lo = 1.0 - w_hi
    W = np.zeros((out_size, in_size), dtype=np.float64)
    np.add.at(W, (np.arange(out_size), lo), w_lo)
    np.add.at(W, (np.arange(out_size), hi), w_hi)
    return W.astype(np.float32)


# ----------------------------------------------------------------------------
# Pallas kernel: batched H contraction + collapsed W contraction on the MXU.
# ----------------------------------------------------------------------------
def _resize_kernel(x_ref, wh_ref, ww_ref, o_ref, *, h_first):
    # x_ref : (B, Hin, Win)   batch of (n,c) slices (free view of NCHW)
    # wh_ref: (Hout, Hin)     H-interp weights, `factor` folded in
    # ww_ref: (Win, Wout)     W-interp weights (already transposed)
    # o_ref : (B, Hout, Wout)
    x = x_ref[...]
    wh = wh_ref[...]
    wwT = ww_ref[...]
    b = x_ref.shape[0]
    # Broadcast Wh across the batch so the H contraction is a plain batched
    # matmul (no result transposes inside the kernel).
    whb = jnp.broadcast_to(wh, (b,) + wh.shape)            # (B, Hout, Hin)
    if h_first:
        z = jnp.einsum('boh,bhw->bow', whb, x,
                       preferred_element_type=jnp.float32)  # (B, Hout, Win)
        out = jnp.einsum('bow,wv->bov', z.astype(x.dtype), wwT,
                         preferred_element_type=jnp.float32)  # (B, Hout, Wout)
    else:
        t = jnp.einsum('bhw,wv->bhv', x, wwT,
                       preferred_element_type=jnp.float32)   # (B, Hin, Wout)
        out = jnp.einsum('boh,bhv->bov', whb, t.astype(x.dtype),
                         preferred_element_type=jnp.float32)  # (B, Hout, Wout)
    o_ref[...] = out.astype(o_ref.dtype)


# ----------------------------------------------------------------------------
# Block selection against a (generation-aware) VMEM budget.
# ----------------------------------------------------------------------------
def _block_working_set_bytes(b, h_in, w_in, h_out, w_out, in_itemsize):
    blk_in = b * h_in * w_in * in_itemsize
    blk_out = b * h_out * w_out * 4                  # f32 output
    weights = (h_out * h_in + w_in * w_out) * in_itemsize
    whb = b * h_out * h_in * 4                       # broadcast Wh (f32 acc path)
    inter = b * max(h_out * w_in, h_in * w_out) * 4  # f32 intermediate
    # in/out blocks are double-buffered by the BlockSpec pipeline; count the
    # (grid-invariant) weights twice as well to stay conservative.
    return 2 * (blk_in + blk_out) + 2 * weights + whb + inter


def _pick_batch_block(nc, h_in, w_in, h_out, w_out, in_itemsize, budget_bytes):
    divisors = [d for d in range(1, nc + 1) if nc % d == 0]
    fitting = [d for d in divisors
               if _block_working_set_bytes(d, h_in, w_in, h_out, w_out,
                                           in_itemsize) <= budget_bytes]
    if not fitting:
        fitting = [1]   # correctness-first fallback; vmem limit raised below
    # Prefer 4-8 grid steps (pipelined DMA overlap), else >= 2 steps (so v7x
    # megacore can shard the "parallel" grid axis), else the largest fitting B.
    preferred = [d for d in fitting if 4 <= nc // d <= 8]
    if preferred:
        return max(preferred)
    two_plus = [d for d in fitting if nc // d >= 2]
    if two_plus:
        return max(two_plus)
    return max(fitting)


# ----------------------------------------------------------------------------
# Wrapper: JAX/Pallas equivalent of ResizeTransform(vel_resize, ndims=2)(x).
# ----------------------------------------------------------------------------
@functools.partial(jax.jit, static_argnames=("vel_resize", "use_bf16"))
def resize_transform(x: jnp.ndarray, vel_resize: float,
                     use_bf16: bool = False) -> jnp.ndarray:
    """x: float32 (N, C, H, W) NCHW (like PyTorch).

    use_bf16=True casts the input and weights to bfloat16 at the pallas_call
    boundary (f32 accumulation kept) -> halves HBM/VMEM traffic; expect ~1e-3
    relative error vs the f32 path.
    """
    factor = 1.0 / vel_resize
    if factor == 1.0:
        return x

    n, c, h_in, w_in = x.shape
    # PyTorch: output spatial size = floor(in_size * scale_factor)
    h_out = int(np.floor(h_in * factor))
    w_out = int(np.floor(w_in * factor))
    nc = n * c

    in_dtype = jnp.bfloat16 if use_bf16 else x.dtype
    in_itemsize = 2 if use_bf16 else 4

    # Generation-aware VMEM budgeting (v7x: 64 MiB physical vs 128 on v5e/v6e).
    try:
        vmem_cap = int(pltpu.get_tpu_info().vmem_capacity_bytes)
    except Exception:
        vmem_cap = 64 * 1024 * 1024
    budget = max(8 << 20, min(vmem_cap // 2, 48 << 20))

    B = _pick_batch_block(nc, h_in, w_in, h_out, w_out, in_itemsize, budget)
    num_blocks = nc // B

    # Weights: factor folded into Wh (both PyTorch branch orders agree since
    # scaling commutes with the linear resample).
    wh_np = (factor * _interp_matrix(h_in, h_out)).astype(np.float32)   # (Hout, Hin)
    wwT_np = np.ascontiguousarray(_interp_matrix(w_in, w_out).T)        # (Win, Wout)

    # Static contraction order: per-slice FLOPs, tie-broken on the smaller
    # VMEM intermediate (z vs t).
    flops_h_first = 2 * (h_out * h_in * w_in + h_out * w_in * w_out)
    flops_w_first = 2 * (h_in * w_in * w_out + h_out * h_in * w_out)
    h_first = (flops_h_first, h_out * w_in) <= (flops_w_first, h_in * w_out)
    flops_total = int(min(flops_h_first, flops_w_first)) * nc

    ws = _block_working_set_bytes(B, h_in, w_in, h_out, w_out, in_itemsize)
    vmem_limit = int(max(32 << 20, ws + (8 << 20)))
    vmem_limit = int(min(vmem_limit, max(vmem_cap - (8 << 20), ws + (4 << 20))))

    bytes_accessed = int(in_itemsize * nc * h_in * w_in
                         + 4 * nc * h_out * w_out
                         + in_itemsize * (wh_np.size + wwT_np.size) * num_blocks)

    # Free views only (no HBM transpose passes): NCHW -> (nc, Hin, Win) in,
    # (nc, Hout, Wout) -> NCHW out.
    x_in = x.reshape(nc, h_in, w_in).astype(in_dtype)
    wh = jnp.asarray(wh_np, dtype=in_dtype)
    wwT = jnp.asarray(wwT_np, dtype=in_dtype)

    kernel = functools.partial(_resize_kernel, h_first=h_first)
    out3d = pl.pallas_call(
        kernel,
        out_shape=jax.ShapeDtypeStruct((nc, h_out, w_out), x.dtype),
        grid_spec=pltpu.PrefetchScalarGridSpec(
            num_scalar_prefetch=0,
            grid=(num_blocks,),
            in_specs=[
                pl.BlockSpec((B, h_in, w_in), lambda i: (i, 0, 0)),
                pl.BlockSpec((h_out, h_in), lambda i: (0, 0)),
                pl.BlockSpec((w_in, w_out), lambda i: (0, 0)),
            ],
            out_specs=pl.BlockSpec((B, h_out, w_out), lambda i: (i, 0, 0)),
        ),
        compiler_params=pltpu.CompilerParams(
            dimension_semantics=("parallel",),
            vmem_limit_bytes=vmem_limit,
        ),
        cost_estimate=pl.CostEstimate(
            flops=flops_total, transcendentals=0, bytes_accessed=bytes_accessed),
    )(x_in, wh, wwT)

    return out3d.reshape(n, c, h_out, w_out)


# ----------------------------------------------------------------------------
# Pure-JAX reference (same math, no Pallas) for a sanity check.
# ----------------------------------------------------------------------------
def _resize_transform_ref(x, vel_resize):
    factor = 1.0 / vel_resize
    if factor == 1.0:
        return x
    _, _, h_in, w_in = x.shape
    h_out = int(np.floor(h_in * factor))
    w_out = int(np.floor(w_in * factor))
    wh = jnp.asarray(_interp_matrix(h_in, h_out))
    ww = jnp.asarray(_interp_matrix(w_in, w_out))
    return factor * jnp.einsum('oh,nchw,pw->ncop', wh, x, ww)


if __name__ == "__main__":
    key = jax.random.PRNGKey(0)
    # 2-D velocity-field-like input: N=2, C=4, H=W=16.
    x = jax.random.normal(key, (2, 4, 16, 16), dtype=jnp.float32)

    # Downsample path (vel_resize=2.0 -> factor=0.5): interpolate then scale.
    y_down = resize_transform(x, vel_resize=2.0)
    jax.block_until_ready(y_down)
    ref_down = _resize_transform_ref(x, 2.0)
    assert y_down.shape == (2, 4, 8, 8)
    np.testing.assert_allclose(np.asarray(y_down), np.asarray(ref_down),
                               rtol=1e-5, atol=1e-5)

    # Upsample path (vel_resize=0.5 -> factor=2.0): scale then interpolate
    # (identical result; scaling commutes with the linear resample).
    y_up = resize_transform(x, vel_resize=0.5)
    jax.block_until_ready(y_up)
    ref_up = _resize_transform_ref(x, 0.5)
    assert y_up.shape == (2, 4, 32, 32)
    np.testing.assert_allclose(np.asarray(y_up), np.asarray(ref_up),
                               rtol=1e-5, atol=1e-5)

    # Optional bf16 input/weight path (f32 accumulation); loose tolerance.
    y_bf16 = resize_transform(x, vel_resize=0.5, use_bf16=True)
    jax.block_until_ready(y_bf16)
    assert y_bf16.shape == (2, 4, 32, 32)
    np.testing.assert_allclose(np.asarray(y_bf16), np.asarray(ref_up),
                               rtol=1e-1, atol=1e-1)

    print("KERNEL_OK")
</pallas_src>

<mosaic_0001>
module attributes {stable_mosaic.version = 11 : i64} {
  func.func @_resize_kernel(%arg0: i32, %arg1: memref<2x16x16xf32, #tpu.memory_space<vmem>>, %arg2: memref<8x16xf32, #tpu.memory_space<vmem>>, %arg3: memref<16x8xf32, #tpu.memory_space<vmem>>, %arg4: memref<2x8x8xf32, #tpu.memory_space<vmem>>) attributes {dimension_semantics = [#tpu.dimension_semantics<parallel>], iteration_bounds = array<i64: 4>, scalar_prefetch = 0 : i64, scratch_operands = 0 : i64, tpu.core_type = #tpu.core_type<tc>, window_params = [{transform_indices = @transform_0, window_bounds = array<i64: 2, 16, 16>}, {pipeline_mode = #tpu.pipeline_mode<synchronous>, transform_indices = @transform_1, window_bounds = array<i64: 8, 16>}, {pipeline_mode = #tpu.pipeline_mode<synchronous>, transform_indices = @transform_2, window_bounds = array<i64: 16, 8>}, {transform_indices = @transform_3, window_bounds = array<i64: 2, 8, 8>}]} {
    %c0 = arith.constant 0 : index
    %c0_0 = arith.constant 0 : index
    %c0_1 = arith.constant 0 : index
    %0 = vector.load %arg1[%c0, %c0_0, %c0_1] : memref<2x16x16xf32, #tpu.memory_space<vmem>>, vector<2x16x16xf32>
    %c0_2 = arith.constant 0 : index
    %c0_3 = arith.constant 0 : index
    %1 = vector.load %arg2[%c0_2, %c0_3] : memref<8x16xf32, #tpu.memory_space<vmem>>, vector<8x16xf32>
    %c0_4 = arith.constant 0 : index
    %c0_5 = arith.constant 0 : index
    %2 = vector.load %arg3[%c0_4, %c0_5] : memref<16x8xf32, #tpu.memory_space<vmem>>, vector<16x8xf32>
    %3 = vector.shape_cast %1 : vector<8x16xf32> to vector<1x8x16xf32>
    %4 = vector.broadcast %3 : vector<1x8x16xf32> to vector<2x8x16xf32>
    "tpu.trace_start"() <{level = 10 : i32, message = "boh,bhw->bow"}> : () -> ()
    %cst = arith.constant dense<0.000000e+00> : vector<2x8x16xf32>
    %5 = tpu.matmul %4, %0, %cst {dimension_numbers = #tpu.dot_dimension_numbers<[2], [1], [1], [2], [0, 0, 0, 1, 1, 2], [0], [0]>} : vector<2x8x16xf32>, vector<2x16x16xf32>, vector<2x8x16xf32> -> vector<2x8x16xf32>
    "tpu.trace_stop"() : () -> ()
    "tpu.trace_start"() <{level = 10 : i32, message = "bow,wv->bov"}> : () -> ()
    %cst_6 = arith.constant dense<0.000000e+00> : vector<2x8x8xf32>
    %6 = tpu.matmul %5, %2, %cst_6 {dimension_numbers = #tpu.dot_dimension_numbers<[2], [0], [0, 1], [1], [0, 0, 0, 1, 1, 1], [], []>} : vector<2x8x16xf32>, vector<16x8xf32>, vector<2x8x8xf32> -> vector<2x8x8xf32>
    "tpu.trace_stop"() : () -> ()
    %c0_7 = arith.constant 0 : index
    %c0_8 = arith.constant 0 : index
    %c0_9 = arith.constant 0 : index
    %7 = vector.load %arg4[%c0_7, %c0_8, %c0_9] : memref<2x8x8xf32, #tpu.memory_space<vmem>>, vector<2x8x8xf32>
    tpu.vector_store %arg4[%c0_7, %c0_8, %c0_9], %6 {strides = array<i32>} : memref<2x8x8xf32, #tpu.memory_space<vmem>>, vector<2x8x8xf32>,
    return
  }
  func.func @transform_0(%arg0: i32) -> (i32, i32, i32) {
    %c0_i32 = arith.constant 0 : i32
    %c0_i32_0 = arith.constant 0 : i32
    %c0_i32_1 = arith.constant 0 : i32
    return %arg0, %c0_i32, %c0_i32_0 : i32, i32, i32
  }
  func.func @transform_1(%arg0: i32) -> (i32, i32) {
    %c0_i32 = arith.constant 0 : i32
    %c0_i32_0 = arith.constant 0 : i32
    %c0_i32_1 = arith.constant 0 : i32
    return %c0_i32, %c0_i32_0 : i32, i32
  }
  func.func @transform_2(%arg0: i32) -> (i32, i32) {
    %c0_i32 = arith.constant 0 : i32
    %c0_i32_0 = arith.constant 0 : i32
    %c0_i32_1 = arith.constant 0 : i32
    return %c0_i32, %c0_i32_0 : i32, i32
  }
  func.func @transform_3(%arg0: i32) -> (i32, i32, i32) {
    %c0_i32 = arith.constant 0 : i32
    %c0_i32_0 = arith.constant 0 : i32
    %c0_i32_1 = arith.constant 0 : i32
    return %arg0, %c0_i32, %c0_i32_0 : i32, i32, i32
  }
}

</mosaic_0001>

<bundles_post_ra>
// kernel: resize_transform.1
= control target key start
LH: loop header
LB: loop body
LE: loop exit
PB: predicated region body
PF: predicated region fallthrough
CT: control target
= control target key end

     0   :  { %s847_s0 = inlined_call_operand.hbm [shape: f32[8,16,16], index: 0, kind: input, shape index: {}]   ;;  %s848_s1 = inlined_call_operand.hbm [shape: f32[8,16], index: 1, kind: input, shape index: {}]   ;;  %s849_s2 = inlined_call_operand.hbm [shape: f32[16,8], index: 2, kind: input, shape index: {}]   ;;  %s850_s3 = inlined_call_operand.hbm [shape: f32[8,8,8], index: 3, kind: output, shape index: {}]  }
   0x1   :  { %851 = sst [smem:[#allocation12_spill]] %s848_s1 }
   0x2   :  { %852 = sst [smem:[#allocation13_spill]] %s849_s2 }
   0x3   :  { %8 = vsyncpa [#allocation3], 0 }
   0x4   :  { %10 = vsyncpa [#allocation3 + $0x1], 0 }
   0x5   :  { %11 = vsyncpa [#allocation6], 0 }
   0x6   :  { %12 = vsyncpa [#allocation4], 0 }
   0x7   :  { %14 = vsyncpa [#allocation4 + $0x1], 0  ;;  %s703_s12 = smov 0   ;;  %s705_s13 = smov 0  }
   0x8   :  { %s707_s14 = smov 0   ;;  %s709_s15 = smov 0  }
   0x9 LB: > { %s724_s16 = sadd.s32 4294967295, %s675_s15   ;;  %s416_s17 = sadd.s32 4294967294, %s675_s15   ;;  %s675_s15 = sphi %s709_s15, %s864_s15   ;;  %s671_s14 = sphi %s707_s14, %s863_s14   ;;  %s667_s13 = sphi %s705_s13, %s862_s13   ;;  %s663_s12 = sphi %s703_s12, %s861_s12  }
   0xa   : > { %s728_s18 = sadd.s32 1, %s675_s15   ;;  %s27_s19 = sadd.s32 1, %s671_s14 }
   0xb   : > { %s24_s20 = ssub.s32 %s675_s15, %s728_s18  ;;  %p34_p0 = scmp.ne.s32.totalorder %s671_s14, %s667_s13 }
   0xc   : > { %p25_p1 = scmp.eq.s32.totalorder %s24_s20, 0  ;;  %p35_p2 = scmp.eq.s32.totalorder %s675_s15, 0 }
   0xd   : > { %p40_p3 = scmp.ne.s32.totalorder %s667_s13, %s663_s12  ;;  %p41_p4 = scmp.eq.s32.totalorder %s724_s16, 0 }
   0xe   : > { %s740_s21 = scalar_select %p25_p1, %s671_s14, %s27_s19  }
   0xf   : > { %p742_p5 = por %p35_p2, %p34_p0  ;;  %p748_p6 = por %p41_p4, %p40_p3 }
  0x10   : > { %p106_p7 = scmp.eq.s32.totalorder %s724_s16, 3  ;;  %p112_p8 = scmp.eq.s32.totalorder %s416_s17, 3 }
  0x11   : > { %p417_p9 = scmp.ge.s32.totalorder %s675_s15, 1  ;;  %p119_p10 = scmp.lt.s32.totalorder %s675_s15, 5 }
  0x12   : > { %p755_p11 = por %p106_p7, %p34_p0  ;;  %p759_p12 = por %p112_p8, %p40_p3 }
  0x13   : > { %p763_p13 = pnand %p417_p9, %p119_p10  ;;  %s858_s1 = sld [smem:[#allocation12_spill]] }
  0x14   : > { %s677_s30 = smov [#allocation5]   ;;  %p473_p2 = scmp.lt.s32.totalorder %s675_s15, 4 }
  0x15   : > { %p456_p1 = pneg %p763_p13  ;;  %s133_s4 = sshll.u32 %s677_s30, 4  ;;  %s134_s4 = int_to_ptr.vmem [resolvable:$true] %s133_s4 }
  0x16   : > { %s859_s2 = sld [smem:[#allocation13_spill]]  ;;  %p780_p3 = pnand %p473_p2, %p742_p5 }
  0x17   : > { %p457_p0 = pnand %p456_p1, %p41_p4  ;;  %s678_s9 = smov [#allocation7]  }
  0x18   : > { %s144_s10 = sshll.u32 %s678_s9, 4  ;;  %s158_s11 = sand.u32 1, %s671_s14   ;;  %s145_s10 = int_to_ptr.vmem [resolvable:$true] %s144_s10 }
  0x19   : > { %s131_s29 = sshll.u32 %s858_s1, 4  ;;  %s679_s17 = smov 128   ;;  %s132_s29 = int_to_ptr.hbm [resolvable:$true] %s131_s29 }
  0x1a   : > { %459 = dma.hbm_to_vmem [thread:$0]  (!%p457_p0), %s132_s29, 128, %s134_s4, [#allocation6]  }
  0x1b   : > { %s680_s19 = smov 8   ;;  %s421_s20 = sshll.u32 %s158_s11, 5 }
  0x1c   : > { %s142_s7 = sshll.u32 %s859_s2, 4  ;;  %s440_s27 = sshll.u32 %s675_s15, 5  ;;  %s143_s7 = int_to_ptr.hbm [resolvable:$true] %s142_s7 }
  0x1d   : > { %462 = dma.hbm_to_vmem [thread:$0]  (!%p457_p0), %s143_s7, 256, %s145_s10, [#allocation6], %s679_s17, %s679_s17, %s680_s19  }
  0x1e   : > { %s168_s5 = scalar_lea.hbm %s847_s0, %s440_s27  ;;  %s162_s29 = scalar_lea.vmem [#allocation2], %s421_s20 }
  0x1f   : > { %s171_s22 = sshll.u32 %s162_s29, 4  ;;  %s169_s4 = sshll.u32 %s168_s5, 4  ;;  %s172_s22 = int_to_ptr.vmem [resolvable:$true] %s171_s22  ;;  %s170_s4 = int_to_ptr.hbm [resolvable:$true] %s169_s4 }
  0x20   : > { %s159_s6 = scalar_lea.sflag [#allocation3], %s158_s11  ;;  %s575_s1 = sshra.s32 %s170_s4, 4  ;;  %s576_s1 = int_to_ptr.hbm [resolvable:$true] %s575_s1 }
  0x21   : > { %s577_s9 = scalar_lea.hbm %s576_s1, 32  ;;  %p579_p7 = pneg %p780_p3 }
  0x22   : > { %p578_p5 = scmp.ne.s32.totalorder %s576_s1, %s577_s9  ;;  %s582_s2 = scalar_lea.hbm %s847_s0, 128 }
  0x23   : > { %p583_p10 = scmp.lt.s32.totalorder %s576_s1, %s847_s0  ;;  %p584_p1 = scmp.lt.s32.totalorder %s582_s2, %s577_s9 }
  0x24   : > { %p580_p8 = pnand %p579_p7, %p578_p5 }
  0x25   : > { %p585_p0 = por %p584_p1, %p583_p10 }
  0x26   : > { %p581_p9 = pneg %p580_p8 }
  0x28   : > { %p586_p2 = pnand %p585_p0, %p581_p9 }
  0x2a   : > { %589 = shalt.err (!%p586_p2)
}
  0x2b   : > { %466 = dma.hbm_to_vmem [thread:$0]  (!%p780_p3), %s170_s4, 512, %s172_s22, %s159_s6, %s679_s17, %s679_s17, %s680_s19  }
  0x2c   : > { %183 = sbr.rel (%p763_p13) target bundleno = 320 (0x140), region = 32  ;;  %s802_s11 = sand.u32 (!%p763_p13), 1, %s667_s13  }
  0x2d   : > { %s426_s20 = sshll.u32 (!%p763_p13), %s802_s11, 5  ;;  %s186_s30 = scalar_lea.sflag (!%p763_p13), [#allocation3], %s802_s11 }
  0x2e   : > { %s189_s5 = scalar_lea.vmem (!%p763_p13), [#allocation2], %s426_s20 }
  0x31   : > { %650 = dma.done.wait (%p748_p6), %s186_s30, 512  }
  0x32   : > { %652 = vsyncadd (%p748_p6), %s186_s30, 4294966784 }
  0x33   : > { %654 = dma.done.wait (%p41_p4), [#allocation6], 384  }
  0x34   : > { %656 = vsyncadd (%p41_p4), [#allocation6], 4294966912  ;;  %v226_v0 = vld [vmem:[%s189_s5 + $0x8] sm:$0xff]  ;;  %v228_v1 = vld [vmem:[%s189_s5 + $0x18] sm:$0xff]  ;;  %vm232_vm0 = vcmask 130048   ;;  %s429_s1 = sshll.u32 %s802_s11, 4 }
  0x35   : > { %v225_v2 = vld [vmem:[%s189_s5] sm:$0xff]  ;;  %250 = vmatpush.msra.mxu0 %v226_v0  ;;  %270 = vmatpush.msra.mxu1 %v228_v1  ;;  %v227_v3 = vld [vmem:[%s189_s5 + $0x10] sm:$0xff]  ;;  %v230_v6 = vld [vmem:[#allocation7] sm:$0xff]  ;;  %s441_s2 = sshll.u32 %s724_s16, 4  ;;  %s222_s17 = scalar_lea.vmem [#allocation8], %s429_s1  ;;  %vm305_vm1 = vcmask 64512  }
  0x36   : > { %v229_v4 = vld [vmem:[#allocation5] sm:$0xff]  ;;  %v231_v5 = vld [vmem:[#allocation7 + $0x8] sm:$0xff]  ;;  %s320_s8 = scalar_lea.hbm %s850_s3, %s441_s2  ;;  %s321_s19 = sshll.u32 %s222_s17, 4  ;;  %s322_s19 = int_to_ptr.vmem [resolvable:$true] %s321_s19 }
  0x37   : > { %296 = vmatpush.msra.mxu2 %v231_v5  ;;  %442 = vmatpush.msra.mxu3 %v231_v5  ;;  %s323_s29 = sshll.u32 %s320_s8, 4  ;;  %s309_s22 = scalar_lea.sflag [#allocation4], %s802_s11  ;;  %s324_s29 = int_to_ptr.hbm [resolvable:$true] %s323_s29 }
  0x38   : > { %251 = vmatpush.msra.mxu0 %v225_v2  ;;  %271 = vmatpush.msra.mxu1 %v227_v3  ;;  %s619_s4 = sshra.s32 %s324_s29, 4  ;;  %s625_s7 = scalar_lea.hbm %s850_s3, 64  ;;  %s620_s4 = int_to_ptr.hbm [resolvable:$true] %s619_s4 }
  0x39   : > { %430 = vmatmul.msk.f32.vlgmr.msra.gmra.mxu0 %vm232_vm0, %v229_v4  ;;  %431 = vmatmul.msk.f32.vlgmr.msra.gmra.mxu1 %vm232_vm0, %v229_v4  ;;  %s621_s6 = scalar_lea.hbm %s620_s4, 16  ;;  %p626_p3 = scmp.lt.s32.totalorder %s620_s4, %s850_s3 }
  0x3a   : > { %297 = vmatpush.msra.mxu2 %v230_v6  ;;  %443 = vmatpush.msra.mxu3 %v230_v6  ;;  %p622_p4 = scmp.ne.s32.totalorder %s620_s4, %s621_s6  ;;  %p627_p5 = scmp.lt.s32.totalorder %s625_s7, %s621_s6 }
  0x3c   : > { %p623_p6 = pnand %p622_p4, %p755_p11  ;;  %p628_p7 = por %p627_p5, %p626_p3 }
  0x3e   : > { %p624_p13 = pneg %p623_p6 }
  0x40   : > { %p629_p8 = pnand %p628_p7, %p624_p13 }
  0xb6   : > { %v253_v7 = vpop.f32.mrf.mxu0  ;;  %v273_v8 = vpop.f32.mrf.mxu1 }
  0xb7   : > { %432 = vmatmul.msk.f32.vlgmr.msra.gmra.mxu2 %vm232_vm0, %v253_v7  ;;  %433 = vmatmul.msk.f32.vlgmr.msra.gmra.mxu3 %vm232_vm0, %v273_v8 }
 0x13a   : > { %v299_v9 = vpop.f32.mrf.mxu2  ;;  %v302_v10 = vpop.f32.mrf.mxu3 }
 0x13b   : > { %306 = vst.msk [vmem:[%s222_s17] sm:$0xff] %vm305_vm1, %v299_v9 }
 0x13c   : > { %307 = vst.msk [vmem:[%s222_s17 + $0x8] sm:$0xff] %vm305_vm1, %v302_v10 }
 0x13d   : > { %632 = shalt.err (!%p629_p8)
}
 0x13e   : > { %s681_s27 = smov 128   ;;  %s682_s11 = smov 8  }
 0x13f   : > { %454 = dma.vmem_to_hbm [thread:$0]  (%p755_p11), %s322_s19, 256, %s324_s29, %s309_s22, %s681_s27, %s681_s27, %s682_s11  }
 0x140 PF: > { %p476_p9 = scmp.ge.s32.totalorder %s675_s15, 2  ;;  %s338_s20 = sand.u32 1, %s663_s12  }
 0x141   : > { %s339_s30 = scalar_lea.sflag [#allocation4], %s338_s20 }
 0x142   : > { %p468_p10 = pnand %p476_p9, %p759_p12 }
 0x144   : > { %p469_p1 = pneg %p468_p10 }
 0x146   : > { %658 = dma.done.wait (%p469_p1), %s339_s30, 256  }
 0x147   : > { %660 = vsyncadd (%p469_p1), %s339_s30, 4294967040  ;;  %p17_p0 = scmp.ge.s32.totalorder %s728_s18, 6   ;;  %s861_s12 = smov %s667_s13 }
 0x148   : > { %s862_s13 = smov %s671_s14  ;;  %s863_s14 = smov %s740_s21 }
 0x149   : > { %s864_s15 = smov %s728_s18  ;;  %19 = sbr.rel (!%p17_p0) target bundleno = 9 (0x9), region = 85 }
 0x14e   :  { %345 = vsyncpa [#allocation3], 1 }
 0x14f   :  { %347 = vsyncpa [#allocation3 + $0x1], 1 }
 0x150   :  { %348 = vsyncpa [#allocation6], 1 }
 0x151   :  { %349 = vsyncpa [#allocation4], 1 }
 0x152   :  { %351 = vsyncpa [#allocation4 + $0x1], 1 }

</bundles_post_ra>
